<compile_context>
chip_gen: v6e
topology: v6e:2x2x1
jax: 0.10.0
libtpu: 0.0.40
codegen_flags: <defaults>
</compile_context>

<pallas_src>
import functools

import jax
import jax.numpy as jnp
from jax.experimental import pallas as pl
from jax.experimental.pallas import tpu as pltpu


def _round_up(x, m):
    return (x + m - 1) // m * m


def _cdiv(a, b):
    return -(-a // b)


# --------------------------------------------------------------------------
# One-time parameter preparation (hoisted out of the per-step call).
# --------------------------------------------------------------------------
def prepare_params(params, input_size, hidden_size, *, col_tile=512):
    """Fuse/pad the 6 weights + 3 biases into block-interleaved operands.

    Column block j of the fused matrices holds [r_j | z_j | n_j], each TN wide,
    so a (rows, 3*TN) BlockSpec slice at block-column j gives contiguous
    r/z/n pre-activations for output columns [j*TN, (j+1)*TN).
    """
    I, H = input_size, hidden_size
    Ip = _round_up(I, 8)       # contraction dim: sublane multiple is enough
    Hp = _round_up(H, 128)     # output columns lane-dense
    TN = min(Hp, _round_up(col_tile, 128))
    nc = Hp // TN

    def pad2(a, rows, cols):
        a = a.astype(jnp.float32)
        return jnp.pad(a, ((0, rows - a.shape[0]), (0, cols - a.shape[1])))

    def fuse(ws, rows, dtype):
        g = jnp.stack([pad2(w, rows, Hp) for w in ws], axis=1)       # (rows, 3, Hp)
        g = g.reshape(rows, 3, nc, TN).transpose(0, 2, 1, 3)          # (rows, nc, 3, TN)
        return g.reshape(rows, 3 * Hp).astype(dtype)

    wx = fuse([params["w_ir"], params["w_ii"], params["w_in"]], Ip, jnp.bfloat16)
    wh = fuse([params["w_hr"], params["w_hi"], params["w_hn"]], Hp, jnp.bfloat16)
    b = fuse([params["b_ir"], params["b_ii"], params["b_in"]], 1, jnp.float32)

    return {"wx": wx, "wh": wh, "b": b,
            "I": I, "H": H, "Ip": Ip, "Hp": Hp, "TN": TN}


# --------------------------------------------------------------------------
# Kernel
# --------------------------------------------------------------------------
def gru_cell_kernel(x_ref, h_ref, hcol_ref, wx_ref, wh_ref, b_ref, o_ref, *, tn):
    # bf16 operands -> single MXU pass; f32 accumulation.
    x = x_ref[...].astype(jnp.bfloat16)          # (TB, Ip)
    h = h_ref[...].astype(jnp.bfloat16)          # (TB, Hp)

    gx = jnp.dot(x, wx_ref[...], preferred_element_type=jnp.float32) + b_ref[...]
    gh = jnp.dot(h, wh_ref[...], preferred_element_type=jnp.float32)

    # Static 128-aligned slices of the block-interleaved [r | z | n] gates.
    r = jax.nn.sigmoid(gx[:, 0:tn] + gh[:, 0:tn])
    z = jax.nn.sigmoid(gx[:, tn:2 * tn] + gh[:, tn:2 * tn])
    n = jnp.tanh(gx[:, 2 * tn:3 * tn] + r * gh[:, 2 * tn:3 * tn])

    hcol = hcol_ref[...]                         # (TB, TN) f32, same columns as output
    # (1 - z) * n + z * h  ==  n + z * (h - n)
    o_ref[...] = (n + z * (hcol - n)).astype(o_ref.dtype)


# --------------------------------------------------------------------------
# Wrapper
# --------------------------------------------------------------------------
def gru_cell(x, h, prep, *, batch_tile=256):
    """x: (B, input_size), h: (B, hidden_size) or None -> (B, hidden_size)."""
    B, I = x.shape
    H, Ip, Hp, TN = prep["H"], prep["Ip"], prep["Hp"], prep["TN"]
    assert I == prep["I"]
    if h is None:
        h = jnp.zeros((B, H), jnp.float32)
    assert h.shape == (B, H)
    nc = Hp // TN

    # Bound batch-padding waste: split B into nb near-equal sublane-aligned tiles.
    nb = max(1, _cdiv(B, batch_tile))
    TB = _round_up(_cdiv(B, nb), 8)
    Bp = nb * TB

    xp = jnp.pad(x.astype(jnp.float32), ((0, Bp - B), (0, Ip - I)))
    hpad = jnp.pad(h.astype(jnp.float32), ((0, Bp - B), (0, Hp - H)))

    kernel = functools.partial(gru_cell_kernel, tn=TN)

    # VMEM residency estimate -> explicit scoped-vmem limit (with headroom).
    n_wbuf = 1 if nc == 1 else 2
    w_bytes = (Ip + Hp) * 3 * TN * 2 * n_wbuf                 # bf16 weight blocks
    b_bytes = 3 * TN * 4 * n_wbuf
    io_bytes = 2 * 4 * (TB * Ip + TB * Hp + 2 * TB * TN)      # dbl-buffered x,h,hcol,out
    tmp_bytes = 2 * TB * 3 * TN * 4                           # gx, gh intermediates
    est = w_bytes + b_bytes + io_bytes + tmp_bytes
    vmem_limit = int(min(64 * 2 ** 20, max(32 * 2 ** 20, 2 * est)))

    def build(single_buffer_const):
        sb = single_buffer_const and nc == 1

        def wspec(block, imap):
            # Constant-index weight/bias blocks: single buffer (halves footprint).
            if sb:
                return pl.BlockSpec(block, imap, pipeline_mode=pl.Buffered(1))
            return pl.BlockSpec(block, imap)

        return pl.pallas_call(
            kernel,
            out_shape=jax.ShapeDtypeStruct((Bp, Hp), jnp.float32),
            grid_spec=pltpu.PrefetchScalarGridSpec(
                num_scalar_prefetch=0,
                grid=(nb, nc),
                in_specs=[
                    pl.BlockSpec((TB, Ip), lambda i, j: (i, 0)),    # x tile
                    pl.BlockSpec((TB, Hp), lambda i, j: (i, 0)),    # h tile (contraction)
                    pl.BlockSpec((TB, TN), lambda i, j: (i, j)),    # h column tile (elementwise)
                    wspec((Ip, 3 * TN), lambda i, j: (0, j)),       # fused Wx block (bf16)
                    wspec((Hp, 3 * TN), lambda i, j: (0, j)),       # fused Wh block (bf16)
                    wspec((1, 3 * TN), lambda i, j: (0, j)),        # fused bias block
                ],
                out_specs=pl.BlockSpec((TB, TN), lambda i, j: (i, j)),
            ),
            compiler_params=pltpu.CompilerParams(
                dimension_semantics=("parallel", "parallel"),
                vmem_limit_bytes=vmem_limit,
            ),
        )

    try:
        out = build(True)(xp, hpad, hpad, prep["wx"], prep["wh"], prep["b"])
    except Exception:
        # Fallback if single-buffered constant blocks are not supported.
        out = build(False)(xp, hpad, hpad, prep["wx"], prep["wh"], prep["b"])

    return out[:B, :H]


# --------------------------------------------------------------------------
# Reference + init (torch.nn.Linear-style uniform init)
# --------------------------------------------------------------------------
def init_params(key, input_size, hidden_size):
    ks = jax.random.split(key, 9)
    si = 1.0 / jnp.sqrt(input_size)
    sh = 1.0 / jnp.sqrt(hidden_size)
    u = lambda k, shape, s: jax.random.uniform(k, shape, jnp.float32, -s, s)
    return {
        # stored transposed: (in_features, out_features)
        "w_ir": u(ks[0], (input_size, hidden_size), si),
        "w_ii": u(ks[1], (input_size, hidden_size), si),
        "w_in": u(ks[2], (input_size, hidden_size), si),
        "w_hr": u(ks[3], (hidden_size, hidden_size), sh),
        "w_hi": u(ks[4], (hidden_size, hidden_size), sh),
        "w_hn": u(ks[5], (hidden_size, hidden_size), sh),
        "b_ir": u(ks[6], (1, hidden_size), si),
        "b_ii": u(ks[7], (1, hidden_size), si),
        "b_in": u(ks[8], (1, hidden_size), si),
    }


def gru_cell_ref(x, h, p):
    r = jax.nn.sigmoid(x @ p["w_ir"] + p["b_ir"] + h @ p["w_hr"])
    z = jax.nn.sigmoid(x @ p["w_ii"] + p["b_ii"] + h @ p["w_hi"])
    n = jnp.tanh(x @ p["w_in"] + p["b_in"] + r * (h @ p["w_hn"]))
    return (1.0 - z) * n + z * h


if __name__ == "__main__":
    batch, input_size, hidden_size = 8, 16, 32

    key = jax.random.PRNGKey(0)
    kx, kh, kp = jax.random.split(key, 3)
    x = jax.random.normal(kx, (batch, input_size), jnp.float32)
    h0 = jax.random.normal(kh, (batch, hidden_size), jnp.float32)
    params = init_params(kp, input_size, hidden_size)

    # One-time fused/padded parameter prep (reused across timesteps).
    prep = prepare_params(params, input_size, hidden_size)

    out = gru_cell(x, h0, prep)
    jax.block_until_ready(out)

    ref = gru_cell_ref(x, h0, params)
    assert out.shape == (batch, hidden_size)
    err = float(jnp.max(jnp.abs(out - ref)))
    # bf16 MXU operands (single pass) vs f32 reference: tolerance relaxed.
    assert err < 2e-2, err

    print("KERNEL_OK")
</pallas_src>

<mosaic_0001>
module attributes {stable_mosaic.version = 11 : i64} {
  func.func @gru_cell_kernel(%arg0: i32, %arg1: i32, %arg2: memref<8x16xf32, #tpu.memory_space<vmem>>, %arg3: memref<8x128xf32, #tpu.memory_space<vmem>>, %arg4: memref<8x128xf32, #tpu.memory_space<vmem>>, %arg5: memref<16x384xbf16, #tpu.memory_space<vmem>>, %arg6: memref<128x384xbf16, #tpu.memory_space<vmem>>, %arg7: memref<1x384xf32, #tpu.memory_space<vmem>>, %arg8: memref<8x128xf32, #tpu.memory_space<vmem>>) attributes {dimension_semantics = [#tpu.dimension_semantics<parallel>, #tpu.dimension_semantics<parallel>], iteration_bounds = array<i64: 1, 1>, scalar_prefetch = 0 : i64, scratch_operands = 0 : i64, tpu.core_type = #tpu.core_type<tc>, window_params = [{transform_indices = @transform_0, window_bounds = array<i64: 8, 16>}, {transform_indices = @transform_1, window_bounds = array<i64: 8, 128>}, {transform_indices = @transform_2, window_bounds = array<i64: 8, 128>}, {pipeline_mode = #tpu.pipeline_mode<synchronous>, transform_indices = @transform_3, window_bounds = array<i64: 16, 384>}, {pipeline_mode = #tpu.pipeline_mode<synchronous>, transform_indices = @transform_4, window_bounds = array<i64: 128, 384>}, {pipeline_mode = #tpu.pipeline_mode<synchronous>, transform_indices = @transform_5, window_bounds = array<i64: 1, 384>}, {transform_indices = @transform_6, window_bounds = array<i64: 8, 128>}]} {
    %c0 = arith.constant 0 : index
    %c0_0 = arith.constant 0 : index
    %0 = vector.load %arg2[%c0, %c0_0] : memref<8x16xf32, #tpu.memory_space<vmem>>, vector<8x16xf32>
    %1 = arith.truncf %0 : vector<8x16xf32> to vector<8x16xbf16>
    %c0_1 = arith.constant 0 : index
    %c0_2 = arith.constant 0 : index
    %2 = vector.load %arg3[%c0_1, %c0_2] : memref<8x128xf32, #tpu.memory_space<vmem>>, vector<8x128xf32>
    %3 = arith.truncf %2 : vector<8x128xf32> to vector<8x128xbf16>
    %c0_3 = arith.constant 0 : index
    %c0_4 = arith.constant 0 : index
    %4 = vector.load %arg5[%c0_3, %c0_4] : memref<16x384xbf16, #tpu.memory_space<vmem>>, vector<16x384xbf16>
    %cst = arith.constant dense<0.000000e+00> : vector<8x384xf32>
    %5 = tpu.matmul %1, %4, %cst {dimension_numbers = #tpu.dot_dimension_numbers<[1], [0], [0], [1], [0, 0, 1, 1], [], []>} : vector<8x16xbf16>, vector<16x384xbf16>, vector<8x384xf32> -> vector<8x384xf32>
    %c0_5 = arith.constant 0 : index
    %c0_6 = arith.constant 0 : index
    %6 = vector.load %arg7[%c0_5, %c0_6] : memref<1x384xf32, #tpu.memory_space<vmem>>, vector<1x384xf32>
    %7 = vector.broadcast %6 : vector<1x384xf32> to vector<8x384xf32>
    %8 = arith.addf %5, %7 : vector<8x384xf32>
    %c0_7 = arith.constant 0 : index
    %c0_8 = arith.constant 0 : index
    %9 = vector.load %arg6[%c0_7, %c0_8] : memref<128x384xbf16, #tpu.memory_space<vmem>>, vector<128x384xbf16>
    %cst_9 = arith.constant dense<0.000000e+00> : vector<8x384xf32>
    %10 = tpu.matmul %3, %9, %cst_9 {dimension_numbers = #tpu.dot_dimension_numbers<[1], [0], [0], [1], [0, 0, 1, 1], [], []>} : vector<8x128xbf16>, vector<128x384xbf16>, vector<8x384xf32> -> vector<8x384xf32>
    %11 = vector.extract_strided_slice %8 {offsets = [0, 0], sizes = [8, 128], strides = [1, 1]} : vector<8x384xf32> to vector<8x128xf32>
    %12 = vector.extract_strided_slice %10 {offsets = [0, 0], sizes = [8, 128], strides = [1, 1]} : vector<8x384xf32> to vector<8x128xf32>
    %13 = arith.addf %11, %12 : vector<8x128xf32>
    %14 = arith.negf %13 : vector<8x128xf32>
    %15 = math.exp %14 : vector<8x128xf32>
    %cst_10 = arith.constant 1.000000e+00 : f32
    %16 = vector.broadcast %cst_10 : f32 to vector<8x128xf32>
    %17 = arith.addf %16, %15 : vector<8x128xf32>
    %18 = arith.divf %16, %17 : vector<8x128xf32>
    %19 = vector.extract_strided_slice %8 {offsets = [0, 128], sizes = [8, 128], strides = [1, 1]} : vector<8x384xf32> to vector<8x128xf32>
    %20 = vector.extract_strided_slice %10 {offsets = [0, 128], sizes = [8, 128], strides = [1, 1]} : vector<8x384xf32> to vector<8x128xf32>
    %21 = arith.addf %19, %20 : vector<8x128xf32>
    %22 = arith.negf %21 : vector<8x128xf32>
    %23 = math.exp %22 : vector<8x128xf32>
    %cst_11 = arith.constant 1.000000e+00 : f32
    %24 = vector.broadcast %cst_11 : f32 to vector<8x128xf32>
    %25 = arith.addf %24, %23 : vector<8x128xf32>
    %26 = arith.divf %24, %25 : vector<8x128xf32>
    %27 = vector.extract_strided_slice %8 {offsets = [0, 256], sizes = [8, 128], strides = [1, 1]} : vector<8x384xf32> to vector<8x128xf32>
    %28 = vector.extract_strided_slice %10 {offsets = [0, 256], sizes = [8, 128], strides = [1, 1]} : vector<8x384xf32> to vector<8x128xf32>
    %29 = arith.mulf %18, %28 : vector<8x128xf32>
    %30 = arith.addf %27, %29 : vector<8x128xf32>
    %31 = math.tanh %30 : vector<8x128xf32>
    %c0_12 = arith.constant 0 : index
    %c0_13 = arith.constant 0 : index
    %32 = vector.load %arg4[%c0_12, %c0_13] : memref<8x128xf32, #tpu.memory_space<vmem>>, vector<8x128xf32>
    %33 = arith.subf %32, %31 : vector<8x128xf32>
    %34 = arith.mulf %26, %33 : vector<8x128xf32>
    %35 = arith.addf %31, %34 : vector<8x128xf32>
    %c0_14 = arith.constant 0 : index
    %c0_15 = arith.constant 0 : index
    %36 = vector.load %arg8[%c0_14, %c0_15] : memref<8x128xf32, #tpu.memory_space<vmem>>, vector<8x128xf32>
    tpu.vector_store %arg8[%c0_14, %c0_15], %35 {strides = array<i32>} : memref<8x128xf32, #tpu.memory_space<vmem>>, vector<8x128xf32>,
    return
  }
  func.func @transform_0(%arg0: i32, %arg1: i32) -> (i32, i32) {
    %c0_i32 = arith.constant 0 : i32
    %c0_i32_0 = arith.constant 0 : i32
    return %arg0, %c0_i32 : i32, i32
  }
  func.func @transform_1(%arg0: i32, %arg1: i32) -> (i32, i32) {
    %c0_i32 = arith.constant 0 : i32
    %c0_i32_0 = arith.constant 0 : i32
    return %arg0, %c0_i32 : i32, i32
  }
  func.func @transform_2(%arg0: i32, %arg1: i32) -> (i32, i32) {
    %c0_i32 = arith.constant 0 : i32
    return %arg0, %arg1 : i32, i32
  }
  func.func @transform_3(%arg0: i32, %arg1: i32) -> (i32, i32) {
    %c0_i32 = arith.constant 0 : i32
    %c0_i32_0 = arith.constant 0 : i32
    return %c0_i32, %arg1 : i32, i32
  }
  func.func @transform_4(%arg0: i32, %arg1: i32) -> (i32, i32) {
    %c0_i32 = arith.constant 0 : i32
    %c0_i32_0 = arith.constant 0 : i32
    return %c0_i32, %arg1 : i32, i32
  }
  func.func @transform_5(%arg0: i32, %arg1: i32) -> (i32, i32) {
    %c0_i32 = arith.constant 0 : i32
    %c0_i32_0 = arith.constant 0 : i32
    return %c0_i32, %arg1 : i32, i32
  }
  func.func @transform_6(%arg0: i32, %arg1: i32) -> (i32, i32) {
    %c0_i32 = arith.constant 0 : i32
    return %arg0, %arg1 : i32, i32
  }
}

module attributes {stable_mosaic.version = 11 : i64} {
  func.func @gru_cell_kernel(%arg0: i32, %arg1: i32, %arg2: memref<8x16xf32, #tpu.memory_space<vmem>>, %arg3: memref<8x128xf32, #tpu.memory_space<vmem>>, %arg4: memref<8x128xf32, #tpu.memory_space<vmem>>, %arg5: memref<16x384xbf16, #tpu.memory_space<vmem>>, %arg6: memref<128x384xbf16, #tpu.memory_space<vmem>>, %arg7: memref<1x384xf32, #tpu.memory_space<vmem>>, %arg8: memref<8x128xf32, #tpu.memory_space<vmem>>) attributes {dimension_semantics = [#tpu.dimension_semantics<parallel>, #tpu.dimension_semantics<parallel>], iteration_bounds = array<i64: 1, 1>, scalar_prefetch = 0 : i64, scratch_operands = 0 : i64, tpu.core_type = #tpu.core_type<tc>, window_params = [{transform_indices = @transform_0, window_bounds = array<i64: 8, 16>}, {transform_indices = @transform_1, window_bounds = array<i64: 8, 128>}, {transform_indices = @transform_2, window_bounds = array<i64: 8, 128>}, {transform_indices = @transform_3, window_bounds = array<i64: 16, 384>}, {transform_indices = @transform_4, window_bounds = array<i64: 128, 384>}, {transform_indices = @transform_5, window_bounds = array<i64: 1, 384>}, {transform_indices = @transform_6, window_bounds = array<i64: 8, 128>}]} {
    %c0 = arith.constant 0 : index
    %c0_0 = arith.constant 0 : index
    %0 = vector.load %arg2[%c0, %c0_0] : memref<8x16xf32, #tpu.memory_space<vmem>>, vector<8x16xf32>
    %1 = arith.truncf %0 : vector<8x16xf32> to vector<8x16xbf16>
    %c0_1 = arith.constant 0 : index
    %c0_2 = arith.constant 0 : index
    %2 = vector.load %arg3[%c0_1, %c0_2] : memref<8x128xf32, #tpu.memory_space<vmem>>, vector<8x128xf32>
    %3 = arith.truncf %2 : vector<8x128xf32> to vector<8x128xbf16>
    %c0_3 = arith.constant 0 : index
    %c0_4 = arith.constant 0 : index
    %4 = vector.load %arg5[%c0_3, %c0_4] : memref<16x384xbf16, #tpu.memory_space<vmem>>, vector<16x384xbf16>
    %cst = arith.constant dense<0.000000e+00> : vector<8x384xf32>
    %5 = tpu.matmul %1, %4, %cst {dimension_numbers = #tpu.dot_dimension_numbers<[1], [0], [0], [1], [0, 0, 1, 1], [], []>} : vector<8x16xbf16>, vector<16x384xbf16>, vector<8x384xf32> -> vector<8x384xf32>
    %c0_5 = arith.constant 0 : index
    %c0_6 = arith.constant 0 : index
    %6 = vector.load %arg7[%c0_5, %c0_6] : memref<1x384xf32, #tpu.memory_space<vmem>>, vector<1x384xf32>
    %7 = vector.broadcast %6 : vector<1x384xf32> to vector<8x384xf32>
    %8 = arith.addf %5, %7 : vector<8x384xf32>
    %c0_7 = arith.constant 0 : index
    %c0_8 = arith.constant 0 : index
    %9 = vector.load %arg6[%c0_7, %c0_8] : memref<128x384xbf16, #tpu.memory_space<vmem>>, vector<128x384xbf16>
    %cst_9 = arith.constant dense<0.000000e+00> : vector<8x384xf32>
    %10 = tpu.matmul %3, %9, %cst_9 {dimension_numbers = #tpu.dot_dimension_numbers<[1], [0], [0], [1], [0, 0, 1, 1], [], []>} : vector<8x128xbf16>, vector<128x384xbf16>, vector<8x384xf32> -> vector<8x384xf32>
    %11 = vector.extract_strided_slice %8 {offsets = [0, 0], sizes = [8, 128], strides = [1, 1]} : vector<8x384xf32> to vector<8x128xf32>
    %12 = vector.extract_strided_slice %10 {offsets = [0, 0], sizes = [8, 128], strides = [1, 1]} : vector<8x384xf32> to vector<8x128xf32>
    %13 = arith.addf %11, %12 : vector<8x128xf32>
    %14 = arith.negf %13 : vector<8x128xf32>
    %15 = math.exp %14 : vector<8x128xf32>
    %cst_10 = arith.constant 1.000000e+00 : f32
    %16 = vector.broadcast %cst_10 : f32 to vector<8x128xf32>
    %17 = arith.addf %16, %15 : vector<8x128xf32>
    %18 = arith.divf %16, %17 : vector<8x128xf32>
    %19 = vector.extract_strided_slice %8 {offsets = [0, 128], sizes = [8, 128], strides = [1, 1]} : vector<8x384xf32> to vector<8x128xf32>
    %20 = vector.extract_strided_slice %10 {offsets = [0, 128], sizes = [8, 128], strides = [1, 1]} : vector<8x384xf32> to vector<8x128xf32>
    %21 = arith.addf %19, %20 : vector<8x128xf32>
    %22 = arith.negf %21 : vector<8x128xf32>
    %23 = math.exp %22 : vector<8x128xf32>
    %cst_11 = arith.constant 1.000000e+00 : f32
    %24 = vector.broadcast %cst_11 : f32 to vector<8x128xf32>
    %25 = arith.addf %24, %23 : vector<8x128xf32>
    %26 = arith.divf %24, %25 : vector<8x128xf32>
    %27 = vector.extract_strided_slice %8 {offsets = [0, 256], sizes = [8, 128], strides = [1, 1]} : vector<8x384xf32> to vector<8x128xf32>
    %28 = vector.extract_strided_slice %10 {offsets = [0, 256], sizes = [8, 128], strides = [1, 1]} : vector<8x384xf32> to vector<8x128xf32>
    %29 = arith.mulf %18, %28 : vector<8x128xf32>
    %30 = arith.addf %27, %29 : vector<8x128xf32>
    %31 = math.tanh %30 : vector<8x128xf32>
    %c0_12 = arith.constant 0 : index
    %c0_13 = arith.constant 0 : index
    %32 = vector.load %arg4[%c0_12, %c0_13] : memref<8x128xf32, #tpu.memory_space<vmem>>, vector<8x128xf32>
    %33 = arith.subf %32, %31 : vector<8x128xf32>
    %34 = arith.mulf %26, %33 : vector<8x128xf32>
    %35 = arith.addf %31, %34 : vector<8x128xf32>
    %c0_14 = arith.constant 0 : index
    %c0_15 = arith.constant 0 : index
    %36 = vector.load %arg8[%c0_14, %c0_15] : memref<8x128xf32, #tpu.memory_space<vmem>>, vector<8x128xf32>
    tpu.vector_store %arg8[%c0_14, %c0_15], %35 {strides = array<i32>} : memref<8x128xf32, #tpu.memory_space<vmem>>, vector<8x128xf32>,
    return
  }
  func.func @transform_0(%arg0: i32, %arg1: i32) -> (i32, i32) {
    %c0_i32 = arith.constant 0 : i32
    %c0_i32_0 = arith.constant 0 : i32
    return %arg0, %c0_i32 : i32, i32
  }
  func.func @transform_1(%arg0: i32, %arg1: i32) -> (i32, i32) {
    %c0_i32 = arith.constant 0 : i32
    %c0_i32_0 = arith.constant 0 : i32
    return %arg0, %c0_i32 : i32, i32
  }
  func.func @transform_2(%arg0: i32, %arg1: i32) -> (i32, i32) {
    %c0_i32 = arith.constant 0 : i32
    return %arg0, %arg1 : i32, i32
  }
  func.func @transform_3(%arg0: i32, %arg1: i32) -> (i32, i32) {
    %c0_i32 = arith.constant 0 : i32
    %c0_i32_0 = arith.constant 0 : i32
    return %c0_i32, %arg1 : i32, i32
  }
  func.func @transform_4(%arg0: i32, %arg1: i32) -> (i32, i32) {
    %c0_i32 = arith.constant 0 : i32
    %c0_i32_0 = arith.constant 0 : i32
    return %c0_i32, %arg1 : i32, i32
  }
  func.func @transform_5(%arg0: i32, %arg1: i32) -> (i32, i32) {
    %c0_i32 = arith.constant 0 : i32
    %c0_i32_0 = arith.constant 0 : i32
    return %c0_i32, %arg1 : i32, i32
  }
  func.func @transform_6(%arg0: i32, %arg1: i32) -> (i32, i32) {
    %c0_i32 = arith.constant 0 : i32
    return %arg0, %arg1 : i32, i32
  }
}

</mosaic_0001>

<bundles_post_ra>
// kernel: tpu_custom_call.1
= control target key start
LH: loop header
LB: loop body
LE: loop exit
PB: predicated region body
PF: predicated region fallthrough
CT: control target
= control target key end

     0   :  { %11 = vsyncpa [#allocation3], 0  ;;  %s834_s0 = inlined_call_operand.hbm [shape: f32[8,16], index: 0, kind: input, shape index: {}]   ;;  %s835_s1 = inlined_call_operand.hbm [shape: f32[8,128], index: 1, kind: input, shape index: {}]   ;;  %s836_s2 = inlined_call_operand.hbm [shape: f32[8,128], index: 2, kind: input, shape index: {}]   ;;  %s837_s3 = inlined_call_operand.hbm [shape: bf16[16,384], index: 3, kind: input, shape index: {}]   ;;  %s838_s4 = inlined_call_operand.hbm [shape: bf16[128,384], index: 4, kind: input, shape index: {}]   ;;  %s839_s5 = inlined_call_operand.vmem [shape: f32[1,384], index: 5, kind: input, shape index: {}]   ;;  %s840_s6 = inlined_call_operand.hbm [shape: f32[8,128], index: 6, kind: output, shape index: {}]  }
   0x1   :  { %12 = vsyncpa [#allocation6], 0 }
   0x2   :  { %13 = vsyncpa [#allocation9], 0 }
   0x3   :  { %14 = vsyncpa [#allocation4], 0  ;;  %s746_s21 = smov [#allocation5]   ;;  %s747_s23 = smov [#allocation8]  }
   0x4   :  { %s31_s22 = sshll.u32 %s746_s21, 4  ;;  %s50_s24 = sshll.u32 %s747_s23, 4  ;;  %s32_s22 = int_to_ptr.vmem [resolvable:$true] %s31_s22  ;;  %s51_s24 = int_to_ptr.vmem [resolvable:$true] %s50_s24 }
   0x5   :  { %s626_s25 = scalar_lea.vmem %s32_s22, 128  ;;  %p631_p1 = scmp.lt.s32.totalorder %s32_s22, %s32_s22 }
   0x6   :  { %p627_p0 = scmp.ne.s32.totalorder %s32_s22, %s626_s25  ;;  %p632_p2 = scmp.lt.s32.totalorder %s626_s25, %s626_s25 }
   0x8   :  { %p633_p3 = por %p632_p2, %p631_p1 }
   0xa   :  { %p634_p4 = pnand %p633_p3, %p627_p0 }
   0xc   :  { %637 = shalt.err (!%p634_p4)
}
   0xd   :  { %34 = dma.hbm_to_vmem [thread:$0]  %s835_s1, 128, %s32_s22, [#allocation6]  }
   0xe   :  { %s646_s28 = scalar_lea.vmem %s51_s24, 384  ;;  %p651_p6 = scmp.lt.s32.totalorder %s51_s24, %s51_s24 }
   0xf   :  { %p647_p5 = scmp.ne.s32.totalorder %s51_s24, %s646_s28  ;;  %p652_p7 = scmp.lt.s32.totalorder %s646_s28, %s646_s28 }
  0x11   :  { %p653_p8 = por %p652_p7, %p651_p6 }
  0x13   :  { %p654_p9 = pnand %p653_p8, %p647_p5 }
  0x15   :  { %657 = shalt.err (!%p654_p9)
}
  0x16   :  { %s748_s29 = smov 192   ;;  %s749_s30 = smov 12  }
  0x17   :  { %56 = dma.hbm_to_vmem [thread:$0]  %s837_s3, 384, %s51_s24, [#allocation9], %s748_s29, %s748_s29, %s749_s30  }
  0x18   :  { %s750_s9 = smov [#allocation2]   ;;  %s751_s11 = smov [#allocation7]  }
  0x19   :  { %s21_s10 = sshll.u32 %s750_s9, 4  ;;  %s41_s1 = sshll.u32 %s751_s11, 4  ;;  %s22_s10 = int_to_ptr.vmem [resolvable:$true] %s21_s10  ;;  %s42_s1 = int_to_ptr.vmem [resolvable:$true] %s41_s1 }
  0x1a   :  { %s666_s12 = scalar_lea.vmem %s22_s10, 128  ;;  %p671_p11 = scmp.lt.s32.totalorder %s22_s10, %s22_s10 }
  0x1b   :  { %p667_p10 = scmp.ne.s32.totalorder %s22_s10, %s666_s12  ;;  %p672_p12 = scmp.lt.s32.totalorder %s666_s12, %s666_s12 }
  0x1d   :  { %p673_p13 = por %p672_p12, %p671_p11 }
  0x1f   :  { %p674_p0 = pnand %p673_p13, %p667_p10 }
  0x21   :  { %677 = shalt.err (!%p674_p0)
}
  0x22   :  { %24 = dma.hbm_to_vmem [thread:$0]  %s834_s0, 128, %s22_s10, [#allocation3]  }
  0x23   :  { %s686_s15 = scalar_lea.vmem %s42_s1, 128  ;;  %p691_p2 = scmp.lt.s32.totalorder %s42_s1, %s42_s1 }
  0x24   :  { %p687_p1 = scmp.ne.s32.totalorder %s42_s1, %s686_s15  ;;  %p692_p3 = scmp.lt.s32.totalorder %s686_s15, %s686_s15 }
  0x26   :  { %p693_p4 = por %p692_p3, %p691_p2 }
  0x28   :  { %p694_p5 = pnand %p693_p4, %p687_p1 }
  0x2a   :  { %697 = shalt.err (!%p694_p5)
}
  0x2b   :  { %44 = dma.hbm_to_vmem [thread:$0]  %s836_s2, 128, %s42_s1, [#allocation6]  }
  0x2c   :  { %s752_s17 = smov [#allocation10]  }
  0x2d   :  { %s62_s18 = sshll.u32 %s752_s17, 4  ;;  %s63_s18 = int_to_ptr.vmem [resolvable:$true] %s62_s18 }
  0x2e   :  { %s706_s19 = scalar_lea.vmem %s63_s18, 3072  ;;  %p711_p7 = scmp.lt.s32.totalorder %s63_s18, %s63_s18 }
  0x2f   :  { %p707_p6 = scmp.ne.s32.totalorder %s63_s18, %s706_s19  ;;  %p712_p8 = scmp.lt.s32.totalorder %s706_s19, %s706_s19 }
  0x31   :  { %p713_p9 = por %p712_p8, %p711_p7 }
  0x33   :  { %p714_p10 = pnand %p713_p9, %p707_p6 }
  0x35   :  { %717 = shalt.err (!%p714_p10)
}
  0x36   :  { %68 = dma.hbm_to_vmem [thread:$0]  %s838_s4, 3072, %s63_s18, [#allocation9], %s748_s29, %s748_s29, %s749_s30  }
  0x37   :  { %738 = dma.done.wait [#allocation3], 128  }
  0x38   :  { %739 = vsyncadd [#allocation3], 4294967168 }
  0x39   :  { %740 = dma.done.wait [#allocation6], 256  }
  0x3a   :  { %741 = vsyncadd [#allocation6], 4294967040 }
  0x3b   :  { %742 = dma.done.wait [#allocation9], 3456  }
  0x3c   :  { %743 = vsyncadd [#allocation9], 4294963840  ;;  %v753_v0 = vmov 0   ;;  %v754_v1 = vmov 0.0   ;;  %vm755_vm0 = vmmov 0   ;;  %v87_v4 = vld [vmem:[#allocation2] sm:$0xff]  ;;  %v97_v40 = vlaneseq }
  0x3d   :  { %164 = vmatprep.mubr.bf16.mxu0 %v753_v0  ;;  %535 = vmatprep.subr.bf16.mxu1 %v754_v1  ;;  %v572_v2 = vld [vmem:[#allocation8 + $0x4] ss:$12 sps:$4 sm:$0xff]   ;;  %v574_v3 = vld [vmem:[#allocation8] ss:$12 sps:$4 sm:$0xff]   ;;  %v88_v5 = vpack.c.bf16 %v87_v4, %v87_v4  ;;  %vm128_vm1 = vcmask 130048  }
  0x3e   :  { %537 = vmatprep.mubr.msk.bf16.mxu1 %vm755_vm0, %v754_v1  ;;  %146 = vmatprep.subr.bf16.mxu0 %v572_v2  ;;  %v577_v6 = vld [vmem:[#allocation10 + $0xac] ss:$12 sps:$4 sm:$0xff]   ;;  %v575_v7 = vld [vmem:[#allocation10 + $0xa8] ss:$12 sps:$4 sm:$0xff]   ;;  %v578_v9 = vld [vmem:[#allocation10 + $0x90] ss:$12 sps:$4 sm:$0xff]  }
  0x3f   :  { %147 = vmatpush1.bf16.msra.mxu0 %v574_v3  ;;  %v580_v8 = vld [vmem:[#allocation10 + $0x94] ss:$12 sps:$4 sm:$0xff]   ;;  %v583_v10 = vld [vmem:[#allocation10 + $0x7c] ss:$12 sps:$4 sm:$0xff]   ;;  %v581_v11 = vld [vmem:[#allocation10 + $0x78] ss:$12 sps:$4 sm:$0xff]  }
  0x40   :  { %373 = vmatprep.subr.bf16.mxu0 %v577_v6  ;;  %v596_v12 = vld [vmem:[#allocation8 + $0x8] ss:$12 sps:$4 sm:$0xff]   ;;  %v584_v15 = vld [vmem:[#allocation10 + $0x60] ss:$12 sps:$4 sm:$0xff]   ;;  %v601_v17 = vld [vmem:[#allocation10 + $0x98] ss:$12 sps:$4 sm:$0xff]  }
  0x41   :  { %v586_v13 = vld [vmem:[#allocation10 + $0x64] ss:$12 sps:$4 sm:$0xff]   ;;  %536 = vmatpush3.bf16.msra.mxu1 %v596_v12  ;;  %v589_v16 = vld [vmem:[#allocation10 + $0x4c] ss:$12 sps:$4 sm:$0xff]   ;;  %v587_v18 = vld [vmem:[#allocation10 + $0x48] ss:$12 sps:$4 sm:$0xff]  }
  0x42   :  { %496 = vmatmul.mubr.msk.bf16.vlgmr.msra.gmra.mxu0 %vm128_vm1, %v88_v5  ;;  %541 = vmatprep.subr.bf16.mxu1 %v754_v1  ;;  %v600_v14 = vld [vmem:[#allocation10 + $0xb0] ss:$12 sps:$4 sm:$0xff]   ;;  %v592_v19 = vld [vmem:[#allocation10 + $0x34] ss:$12 sps:$4 sm:$0xff]   ;;  %v593_v24 = vld [vmem:[#allocation10 + $0x18] ss:$12 sps:$4 sm:$0xff]  }
  0x43   :  { %374 = vmatpush1.bf16.msra.mxu0 %v575_v7  ;;  %405 = vmatprep.mubr.bf16.mxu0 %v753_v0  ;;  %v602_v20 = vld [vmem:[#allocation10 + $0x80] ss:$12 sps:$4 sm:$0xff]   ;;  %v590_v21 = vld [vmem:[#allocation10 + $0x30] ss:$12 sps:$4 sm:$0xff]   ;;  %v603_v23 = vld [vmem:[#allocation10 + $0x68] ss:$12 sps:$4 sm:$0xff]  }
  0x44   :  { %375 = vmatprep.subr.bf16.mxu0 %v580_v8  ;;  %538 = vmatmul.mubr.msk.bf16.vlgmr.msra.gmra.mxu1 %vm128_vm1, %v88_v5  ;;  %v595_v22 = vld [vmem:[#allocation10 + $0x1c] ss:$12 sps:$4 sm:$0xff]   ;;  %v599_v25 = vld [vmem:[#allocation10 + $0x4] ss:$12 sps:$4 sm:$0xff]   ;;  %v597_v27 = vld [vmem:[#allocation10] ss:$12 sps:$4 sm:$0xff]  }
  0x45   :  { %542 = vmatpush3.bf16.msra.mxu1 %v600_v14  ;;  %557 = vmatprep.mubr.msk.bf16.mxu1 %vm755_vm0, %v754_v1  ;;  %v604_v26 = vld [vmem:[#allocation10 + $0x50] ss:$12 sps:$4 sm:$0xff]   ;;  %v605_v29 = vld [vmem:[#allocation10 + $0x38] ss:$12 sps:$4 sm:$0xff]   ;;  %v606_v31 = vld [vmem:[#allocation10 + $0x20] ss:$12 sps:$4 sm:$0xff]  }
  0x46   :  { %543 = vmatprep.subr.bf16.mxu1 %v754_v1  ;;  %v89_v28 = vld [vmem:[#allocation5] sm:$0xff]  ;;  %v607_v32 = vld [vmem:[#allocation10 + $0x8] ss:$12 sps:$4 sm:$0xff]   ;;  %v98_v42 = vshrl.u32 %v97_v40, 7  ;;  %v95_v44 = vld [vmem:[%s839_s5] sm:$0x7] }
  0x47   :  { %376 = vmatpush1.bf16.msra.mxu0 %v578_v9  ;;  %v90_v30 = vpack.c.bf16 %v89_v28, %v89_v28  ;;  %v471_v8 = vld [vmem:[#allocation7] sm:$0xff]  ;;  %s756_s5 = smov [#allocation11]  }
  0x48   :  { %377 = vmatprep.subr.bf16.mxu0 %v583_v10  ;;  %v99_v43 = vsub.s32 0, %v98_v42  ;;  %v103_v49 = vsub.s32 1, %v98_v42  ;;  %v107_v0 = vsub.s32 2, %v98_v42  ;;  %s482_s21 = sshll.u32 %s756_s5, 4  ;;  %s483_s21 = int_to_ptr.vmem [resolvable:$true] %s482_s21 }
  0x49   :  { %544 = vmatpush3.bf16.msra.mxu1 %v601_v17  ;;  %s718_s22 = scalar_lea.vmem %s483_s21, 128  ;;  %p723_p12 = scmp.lt.s32.totalorder %s483_s21, %s483_s21 }
  0x4a   :  { %545 = vmatprep.subr.bf16.mxu1 %v754_v1  ;;  %v100_v45 = vrot.slane %v95_v44, %v99_v43  ;;  %v104_v53 = vrot.slane %v95_v44, %v103_v49  ;;  %p719_p11 = scmp.ne.s32.totalorder %s483_s21, %s718_s22  ;;  %p724_p13 = scmp.lt.s32.totalorder %s718_s22, %s718_s22 }
  0x4b   :  { %378 = vmatpush1.bf16.msra.mxu0 %v581_v11 }
  0x4c   :  { %379 = vmatprep.subr.bf16.mxu0 %v586_v13  ;;  %p725_p0 = por %p724_p13, %p723_p12 }
  0x4d   :  { %546 = vmatpush3.bf16.msra.mxu1 %v602_v20 }
  0x4e   :  { %547 = vmatprep.subr.bf16.mxu1 %v754_v1  ;;  %p726_p1 = pnand %p725_p0, %p719_p11 }
  0x4f   :  { %380 = vmatpush1.bf16.msra.mxu0 %v584_v15 }
  0x50   :  { %381 = vmatprep.subr.bf16.mxu0 %v589_v16 }
  0x51   :  { %548 = vmatpush3.bf16.msra.mxu1 %v603_v23 }
  0x52   :  { %549 = vmatprep.subr.bf16.mxu1 %v754_v1 }
  0x53   :  { %382 = vmatpush1.bf16.msra.mxu0 %v587_v18 }
  0x54   :  { %383 = vmatprep.subr.bf16.mxu0 %v592_v19 }
  0x55   :  { %550 = vmatpush3.bf16.msra.mxu1 %v604_v26 }
  0x56   :  { %551 = vmatprep.subr.bf16.mxu1 %v754_v1 }
  0x57   :  { %384 = vmatpush1.bf16.msra.mxu0 %v590_v21 }
  0x58   :  { %385 = vmatprep.subr.bf16.mxu0 %v595_v22 }
  0x59   :  { %552 = vmatpush3.bf16.msra.mxu1 %v605_v29 }
  0x5a   :  { %553 = vmatprep.subr.bf16.mxu1 %v754_v1 }
  0x5b   :  { %386 = vmatpush1.bf16.msra.mxu0 %v593_v24 }
  0x5c   :  { %387 = vmatprep.subr.bf16.mxu0 %v599_v25 }
  0x5d   :  { %554 = vmatpush3.bf16.msra.mxu1 %v606_v31 }
  0x5e   :  { %555 = vmatprep.subr.bf16.mxu1 %v754_v1  ;;  %v108_v1 = vrot.slane %v95_v44, %v107_v0 }
  0x5f   :  { %388 = vmatpush1.bf16.msra.mxu0 %v597_v27 }
  0x61   :  { %556 = vmatpush3.bf16.msra.mxu1 %v607_v32 }
  0x62   :  { %406 = vmatmul.mubr.bf16.vlgmr.msra.gmra.mxu0 %v90_v30 }
  0x64   :  { %558 = vmatmul.mubr.bf16.vlgmr.msra.gmra.mxu1 %v90_v30 }
 0x102   :  { %v166_v33 = vpop.f32.mrf.mxu0 }
 0x103   :  { %v167_v46 = vadd.f32 %v166_v33, %v100_v45 }
 0x104   :  { %v168_v34 = vpop.f32.mrf.mxu0  ;;  %v207_v37 = vpop.f32.mrf.mxu1 }
 0x105   :  { %v169_v55 = vadd.f32 %v168_v34, %v104_v53  ;;  %v208_v4 = vadd.f32 %v207_v37, %v108_v1 }
 0x106   :  { %v170_v35 = vpop.f32.mrf.mxu0  ;;  %v539_v38 = vpop.f32.mrf.mxu1 }
 0x108   :  { %v171_v36 = vpop.f32.mrf.mxu0  ;;  %v210_v39 = vpop.f32.mrf.mxu1 }
 0x10a   :  { %v540_v41 = vpop.f32.mrf.mxu1 }
 0x122   :  { %v407_v47 = vpop.f32.mrf.mxu0 }
 0x123   :  { %v454_v48 = vadd.f32 %v407_v47, %v167_v46 }
 0x124   :  { %v409_v50 = vpop.f32.mrf.mxu0  ;;  %v448_v56 = vpop.f32.mrf.mxu1 }
 0x125   :  { %v522_v51 = vmul.f32 -1.442695, %v454_v48  ;;  %v461_v57 = vadd.f32 %v409_v50, %v169_v55 }
 0x126   :  { %v411_v52 = vpop.f32.mrf.mxu0  ;;  %v559_v58 = vpop.f32.mrf.mxu1 }
 0x127   :  { %608 = vpow2.f32 %v522_v51  ;;  %v523_v60 = vmul.f32 -1.442695, %v461_v57 }
 0x128   :  { %v412_v54 = vpop.f32.mrf.mxu0  ;;  %v451_v59 = vpop.f32.mrf.mxu1 }
 0x129   :  { %610 = vpow2.f32 %v523_v60 }
 0x12a   :  { %v560_v61 = vpop.f32.mrf.mxu1 }
 0x134   :  { %v609_v62 = vpop.eup %608 }
 0x135   :  { %v458_v63 = vadd.f32 1.0, %v609_v62 }
 0x136   :  { %v611_v2 = vpop.eup %610 }
 0x137   :  { %612 = vrcp.f32 %v458_v63  ;;  %v465_v6 = vadd.f32 1.0, %v611_v2 }
 0x144   :  { %v613_v3 = vpop.eup %612 }
 0x145   :  { %v468_v5 = vmul.f32 %v613_v3, %v448_v56 }
 0x147   :  { %v469_v7 = vadd.f32 %v468_v5, %v208_v4 }
 0x149   :  { %614 = vtanh.f32 %v469_v7 }
 0x14a   :  { %616 = vrcp.f32 %v465_v6 }
 0x156   :  { %v615_v9 = vpop.eup %614 }
 0x157   :  { %v472_v10 = vsub.f32 %v471_v8, %v615_v9  ;;  %v617_v11 = vpop.eup %616 }
 0x159   :  { %v473_v12 = vmul.f32 %v617_v11, %v472_v10 }
 0x15b   :  { %v474_v13 = vadd.f32 %v615_v9, %v473_v12 }
 0x15d   :  { %475 = vst [vmem:[#allocation11] sm:$0xff] %v474_v13 }
 0x15e   :  { %729 = shalt.err (!%p726_p1)
}
 0x15f   :  { %485 = dma.vmem_to_hbm [thread:$0]  %s483_s21, 128, %s840_s6, [#allocation4]  }
 0x160   :  { %744 = dma.done.wait [#allocation4], 128  }
 0x161   :  { %745 = vsyncadd [#allocation4], 4294967168 }
 0x162   :  { %489 = vsyncpa [#allocation3], 1 }
 0x163   :  { %490 = vsyncpa [#allocation6], 1 }
 0x164   :  { %491 = vsyncpa [#allocation9], 1 }
 0x165   :  { %492 = vsyncpa [#allocation4], 1 }

// kernel: tpu_custom_call.1
= control target key start
LH: loop header
LB: loop body
LE: loop exit
PB: predicated region body
PF: predicated region fallthrough
CT: control target
= control target key end

     0   :  { %11 = vsyncpa [#allocation3], 0  ;;  %s834_s0 = inlined_call_operand.hbm [shape: f32[8,16], index: 0, kind: input, shape index: {}]   ;;  %s835_s1 = inlined_call_operand.hbm [shape: f32[8,128], index: 1, kind: input, shape index: {}]   ;;  %s836_s2 = inlined_call_operand.hbm [shape: f32[8,128], index: 2, kind: input, shape index: {}]   ;;  %s837_s3 = inlined_call_operand.hbm [shape: bf16[16,384], index: 3, kind: input, shape index: {}]   ;;  %s838_s4 = inlined_call_operand.hbm [shape: bf16[128,384], index: 4, kind: input, shape index: {}]   ;;  %s839_s5 = inlined_call_operand.vmem [shape: f32[1,384], index: 5, kind: input, shape index: {}]   ;;  %s840_s6 = inlined_call_operand.hbm [shape: f32[8,128], index: 6, kind: output, shape index: {}]  }
   0x1   :  { %12 = vsyncpa [#allocation6], 0 }
   0x2   :  { %13 = vsyncpa [#allocation9], 0 }
   0x3   :  { %14 = vsyncpa [#allocation4], 0  ;;  %s746_s21 = smov [#allocation5]   ;;  %s747_s23 = smov [#allocation8]  }
   0x4   :  { %s31_s22 = sshll.u32 %s746_s21, 4  ;;  %s50_s24 = sshll.u32 %s747_s23, 4  ;;  %s32_s22 = int_to_ptr.vmem [resolvable:$true] %s31_s22  ;;  %s51_s24 = int_to_ptr.vmem [resolvable:$true] %s50_s24 }
   0x5   :  { %s626_s25 = scalar_lea.vmem %s32_s22, 128  ;;  %p631_p1 = scmp.lt.s32.totalorder %s32_s22, %s32_s22 }
   0x6   :  { %p627_p0 = scmp.ne.s32.totalorder %s32_s22, %s626_s25  ;;  %p632_p2 = scmp.lt.s32.totalorder %s626_s25, %s626_s25 }
   0x8   :  { %p633_p3 = por %p632_p2, %p631_p1 }
   0xa   :  { %p634_p4 = pnand %p633_p3, %p627_p0 }
   0xc   :  { %637 = shalt.err (!%p634_p4)
}
   0xd   :  { %34 = dma.hbm_to_vmem [thread:$0]  %s835_s1, 128, %s32_s22, [#allocation6]  }
   0xe   :  { %s646_s28 = scalar_lea.vmem %s51_s24, 384  ;;  %p651_p6 = scmp.lt.s32.totalorder %s51_s24, %s51_s24 }
   0xf   :  { %p647_p5 = scmp.ne.s32.totalorder %s51_s24, %s646_s28  ;;  %p652_p7 = scmp.lt.s32.totalorder %s646_s28, %s646_s28 }
  0x11   :  { %p653_p8 = por %p652_p7, %p651_p6 }
  0x13   :  { %p654_p9 = pnand %p653_p8, %p647_p5 }
  0x15   :  { %657 = shalt.err (!%p654_p9)
}
  0x16   :  { %s748_s29 = smov 192   ;;  %s749_s30 = smov 12  }
  0x17   :  { %56 = dma.hbm_to_vmem [thread:$0]  %s837_s3, 384, %s51_s24, [#allocation9], %s748_s29, %s748_s29, %s749_s30  }
  0x18   :  { %s750_s9 = smov [#allocation2]   ;;  %s751_s11 = smov [#allocation7]  }
  0x19   :  { %s21_s10 = sshll.u32 %s750_s9, 4  ;;  %s41_s1 = sshll.u32 %s751_s11, 4  ;;  %s22_s10 = int_to_ptr.vmem [resolvable:$true] %s21_s10  ;;  %s42_s1 = int_to_ptr.vmem [resolvable:$true] %s41_s1 }
  0x1a   :  { %s666_s12 = scalar_lea.vmem %s22_s10, 128  ;;  %p671_p11 = scmp.lt.s32.totalorder %s22_s10, %s22_s10 }
  0x1b   :  { %p667_p10 = scmp.ne.s32.totalorder %s22_s10, %s666_s12  ;;  %p672_p12 = scmp.lt.s32.totalorder %s666_s12, %s666_s12 }
  0x1d   :  { %p673_p13 = por %p672_p12, %p671_p11 }
  0x1f   :  { %p674_p0 = pnand %p673_p13, %p667_p10 }
  0x21   :  { %677 = shalt.err (!%p674_p0)
}
  0x22   :  { %24 = dma.hbm_to_vmem [thread:$0]  %s834_s0, 128, %s22_s10, [#allocation3]  }
  0x23   :  { %s686_s15 = scalar_lea.vmem %s42_s1, 128  ;;  %p691_p2 = scmp.lt.s32.totalorder %s42_s1, %s42_s1 }
  0x24   :  { %p687_p1 = scmp.ne.s32.totalorder %s42_s1, %s686_s15  ;;  %p692_p3 = scmp.lt.s32.totalorder %s686_s15, %s686_s15 }
  0x26   :  { %p693_p4 = por %p692_p3, %p691_p2 }
  0x28   :  { %p694_p5 = pnand %p693_p4, %p687_p1 }
  0x2a   :  { %697 = shalt.err (!%p694_p5)
}
  0x2b   :  { %44 = dma.hbm_to_vmem [thread:$0]  %s836_s2, 128, %s42_s1, [#allocation6]  }
  0x2c   :  { %s752_s17 = smov [#allocation10]  }
  0x2d   :  { %s62_s18 = sshll.u32 %s752_s17, 4  ;;  %s63_s18 = int_to_ptr.vmem [resolvable:$true] %s62_s18 }
  0x2e   :  { %s706_s19 = scalar_lea.vmem %s63_s18, 3072  ;;  %p711_p7 = scmp.lt.s32.totalorder %s63_s18, %s63_s18 }
  0x2f   :  { %p707_p6 = scmp.ne.s32.totalorder %s63_s18, %s706_s19  ;;  %p712_p8 = scmp.lt.s32.totalorder %s706_s19, %s706_s19 }
  0x31   :  { %p713_p9 = por %p712_p8, %p711_p7 }
  0x33   :  { %p714_p10 = pnand %p713_p9, %p707_p6 }
  0x35   :  { %717 = shalt.err (!%p714_p10)
}
  0x36   :  { %68 = dma.hbm_to_vmem [thread:$0]  %s838_s4, 3072, %s63_s18, [#allocation9], %s748_s29, %s748_s29, %s749_s30  }
  0x37   :  { %738 = dma.done.wait [#allocation3], 128  }
  0x38   :  { %739 = vsyncadd [#allocation3], 4294967168 }
  0x39   :  { %740 = dma.done.wait [#allocation6], 256  }
  0x3a   :  { %741 = vsyncadd [#allocation6], 4294967040 }
  0x3b   :  { %742 = dma.done.wait [#allocation9], 3456  }
  0x3c   :  { %743 = vsyncadd [#allocation9], 4294963840  ;;  %v753_v0 = vmov 0   ;;  %v754_v1 = vmov 0.0   ;;  %vm755_vm0 = vmmov 0   ;;  %v87_v4 = vld [vmem:[#allocation2] sm:$0xff]  ;;  %v97_v40 = vlaneseq }
  0x3d   :  { %164 = vmatprep.mubr.bf16.mxu0 %v753_v0  ;;  %535 = vmatprep.subr.bf16.mxu1 %v754_v1  ;;  %v572_v2 = vld [vmem:[#allocation8 + $0x4] ss:$12 sps:$4 sm:$0xff]   ;;  %v574_v3 = vld [vmem:[#allocation8] ss:$12 sps:$4 sm:$0xff]   ;;  %v88_v5 = vpack.c.bf16 %v87_v4, %v87_v4  ;;  %vm128_vm1 = vcmask 130048  }
  0x3e   :  { %537 = vmatprep.mubr.msk.bf16.mxu1 %vm755_vm0, %v754_v1  ;;  %146 = vmatprep.subr.bf16.mxu0 %v572_v2  ;;  %v577_v6 = vld [vmem:[#allocation10 + $0xac] ss:$12 sps:$4 sm:$0xff]   ;;  %v575_v7 = vld [vmem:[#allocation10 + $0xa8] ss:$12 sps:$4 sm:$0xff]   ;;  %v578_v9 = vld [vmem:[#allocation10 + $0x90] ss:$12 sps:$4 sm:$0xff]  }
  0x3f   :  { %147 = vmatpush1.bf16.msra.mxu0 %v574_v3  ;;  %v580_v8 = vld [vmem:[#allocation10 + $0x94] ss:$12 sps:$4 sm:$0xff]   ;;  %v583_v10 = vld [vmem:[#allocation10 + $0x7c] ss:$12 sps:$4 sm:$0xff]   ;;  %v581_v11 = vld [vmem:[#allocation10 + $0x78] ss:$12 sps:$4 sm:$0xff]  }
  0x40   :  { %373 = vmatprep.subr.bf16.mxu0 %v577_v6  ;;  %v596_v12 = vld [vmem:[#allocation8 + $0x8] ss:$12 sps:$4 sm:$0xff]   ;;  %v584_v15 = vld [vmem:[#allocation10 + $0x60] ss:$12 sps:$4 sm:$0xff]   ;;  %v601_v17 = vld [vmem:[#allocation10 + $0x98] ss:$12 sps:$4 sm:$0xff]  }
  0x41   :  { %v586_v13 = vld [vmem:[#allocation10 + $0x64] ss:$12 sps:$4 sm:$0xff]   ;;  %536 = vmatpush3.bf16.msra.mxu1 %v596_v12  ;;  %v589_v16 = vld [vmem:[#allocation10 + $0x4c] ss:$12 sps:$4 sm:$0xff]   ;;  %v587_v18 = vld [vmem:[#allocation10 + $0x48] ss:$12 sps:$4 sm:$0xff]  }
  0x42   :  { %496 = vmatmul.mubr.msk.bf16.vlgmr.msra.gmra.mxu0 %vm128_vm1, %v88_v5  ;;  %541 = vmatprep.subr.bf16.mxu1 %v754_v1  ;;  %v600_v14 = vld [vmem:[#allocation10 + $0xb0] ss:$12 sps:$4 sm:$0xff]   ;;  %v592_v19 = vld [vmem:[#allocation10 + $0x34] ss:$12 sps:$4 sm:$0xff]   ;;  %v593_v24 = vld [vmem:[#allocation10 + $0x18] ss:$12 sps:$4 sm:$0xff]  }
  0x43   :  { %374 = vmatpush1.bf16.msra.mxu0 %v575_v7  ;;  %405 = vmatprep.mubr.bf16.mxu0 %v753_v0  ;;  %v602_v20 = vld [vmem:[#allocation10 + $0x80] ss:$12 sps:$4 sm:$0xff]   ;;  %v590_v21 = vld [vmem:[#allocation10 + $0x30] ss:$12 sps:$4 sm:$0xff]   ;;  %v603_v23 = vld [vmem:[#allocation10 + $0x68] ss:$12 sps:$4 sm:$0xff]  }
  0x44   :  { %375 = vmatprep.subr.bf16.mxu0 %v580_v8  ;;  %538 = vmatmul.mubr.msk.bf16.vlgmr.msra.gmra.mxu1 %vm128_vm1, %v88_v5  ;;  %v595_v22 = vld [vmem:[#allocation10 + $0x1c] ss:$12 sps:$4 sm:$0xff]   ;;  %v599_v25 = vld [vmem:[#allocation10 + $0x4] ss:$12 sps:$4 sm:$0xff]   ;;  %v597_v27 = vld [vmem:[#allocation10] ss:$12 sps:$4 sm:$0xff]  }
  0x45   :  { %542 = vmatpush3.bf16.msra.mxu1 %v600_v14  ;;  %557 = vmatprep.mubr.msk.bf16.mxu1 %vm755_vm0, %v754_v1  ;;  %v604_v26 = vld [vmem:[#allocation10 + $0x50] ss:$12 sps:$4 sm:$0xff]   ;;  %v605_v29 = vld [vmem:[#allocation10 + $0x38] ss:$12 sps:$4 sm:$0xff]   ;;  %v606_v31 = vld [vmem:[#allocation10 + $0x20] ss:$12 sps:$4 sm:$0xff]  }
  0x46   :  { %543 = vmatprep.subr.bf16.mxu1 %v754_v1  ;;  %v89_v28 = vld [vmem:[#allocation5] sm:$0xff]  ;;  %v607_v32 = vld [vmem:[#allocation10 + $0x8] ss:$12 sps:$4 sm:$0xff]   ;;  %v98_v42 = vshrl.u32 %v97_v40, 7  ;;  %v95_v44 = vld [vmem:[%s839_s5] sm:$0x7] }
  0x47   :  { %376 = vmatpush1.bf16.msra.mxu0 %v578_v9  ;;  %v90_v30 = vpack.c.bf16 %v89_v28, %v89_v28  ;;  %v471_v8 = vld [vmem:[#allocation7] sm:$0xff]  ;;  %s756_s5 = smov [#allocation11]  }
  0x48   :  { %377 = vmatprep.subr.bf16.mxu0 %v583_v10  ;;  %v99_v43 = vsub.s32 0, %v98_v42  ;;  %v103_v49 = vsub.s32 1, %v98_v42  ;;  %v107_v0 = vsub.s32 2, %v98_v42  ;;  %s482_s21 = sshll.u32 %s756_s5, 4  ;;  %s483_s21 = int_to_ptr.vmem [resolvable:$true] %s482_s21 }
  0x49   :  { %544 = vmatpush3.bf16.msra.mxu1 %v601_v17  ;;  %s718_s22 = scalar_lea.vmem %s483_s21, 128  ;;  %p723_p12 = scmp.lt.s32.totalorder %s483_s21, %s483_s21 }
  0x4a   :  { %545 = vmatprep.subr.bf16.mxu1 %v754_v1  ;;  %v100_v45 = vrot.slane %v95_v44, %v99_v43  ;;  %v104_v53 = vrot.slane %v95_v44, %v103_v49  ;;  %p719_p11 = scmp.ne.s32.totalorder %s483_s21, %s718_s22  ;;  %p724_p13 = scmp.lt.s32.totalorder %s718_s22, %s718_s22 }
  0x4b   :  { %378 = vmatpush1.bf16.msra.mxu0 %v581_v11 }
  0x4c   :  { %379 = vmatprep.subr.bf16.mxu0 %v586_v13  ;;  %p725_p0 = por %p724_p13, %p723_p12 }
  0x4d   :  { %546 = vmatpush3.bf16.msra.mxu1 %v602_v20 }
  0x4e   :  { %547 = vmatprep.subr.bf16.mxu1 %v754_v1  ;;  %p726_p1 = pnand %p725_p0, %p719_p11 }
  0x4f   :  { %380 = vmatpush1.bf16.msra.mxu0 %v584_v15 }
  0x50   :  { %381 = vmatprep.subr.bf16.mxu0 %v589_v16 }
  0x51   :  { %548 = vmatpush3.bf16.msra.mxu1 %v603_v23 }
  0x52   :  { %549 = vmatprep.subr.bf16.mxu1 %v754_v1 }
  0x53   :  { %382 = vmatpush1.bf16.msra.mxu0 %v587_v18 }
  0x54   :  { %383 = vmatprep.subr.bf16.mxu0 %v592_v19 }
  0x55   :  { %550 = vmatpush3.bf16.msra.mxu1 %v604_v26 }
  0x56   :  { %551 = vmatprep.subr.bf16.mxu1 %v754_v1 }
  0x57   :  { %384 = vmatpush1.bf16.msra.mxu0 %v590_v21 }
  0x58   :  { %385 = vmatprep.subr.bf16.mxu0 %v595_v22 }
  0x59   :  { %552 = vmatpush3.bf16.msra.mxu1 %v605_v29 }
  0x5a   :  { %553 = vmatprep.subr.bf16.mxu1 %v754_v1 }
  0x5b   :  { %386 = vmatpush1.bf16.msra.mxu0 %v593_v24 }
  0x5c   :  { %387 = vmatprep.subr.bf16.mxu0 %v599_v25 }
  0x5d   :  { %554 = vmatpush3.bf16.msra.mxu1 %v606_v31 }
  0x5e   :  { %555 = vmatprep.subr.bf16.mxu1 %v754_v1  ;;  %v108_v1 = vrot.slane %v95_v44, %v107_v0 }
  0x5f   :  { %388 = vmatpush1.bf16.msra.mxu0 %v597_v27 }
  0x61   :  { %556 = vmatpush3.bf16.msra.mxu1 %v607_v32 }
  0x62   :  { %406 = vmatmul.mubr.bf16.vlgmr.msra.gmra.mxu0 %v90_v30 }
  0x64   :  { %558 = vmatmul.mubr.bf16.vlgmr.msra.gmra.mxu1 %v90_v30 }
 0x102   :  { %v166_v33 = vpop.f32.mrf.mxu0 }
 0x103   :  { %v167_v46 = vadd.f32 %v166_v33, %v100_v45 }
 0x104   :  { %v168_v34 = vpop.f32.mrf.mxu0  ;;  %v207_v37 = vpop.f32.mrf.mxu1 }
 0x105   :  { %v169_v55 = vadd.f32 %v168_v34, %v104_v53  ;;  %v208_v4 = vadd.f32 %v207_v37, %v108_v1 }
 0x106   :  { %v170_v35 = vpop.f32.mrf.mxu0  ;;  %v539_v38 = vpop.f32.mrf.mxu1 }
 0x108   :  { %v171_v36 = vpop.f32.mrf.mxu0  ;;  %v210_v39 = vpop.f32.mrf.mxu1 }
 0x10a   :  { %v540_v41 = vpop.f32.mrf.mxu1 }
 0x122   :  { %v407_v47 = vpop.f32.mrf.mxu0 }
 0x123   :  { %v454_v48 = vadd.f32 %v407_v47, %v167_v46 }
 0x124   :  { %v409_v50 = vpop.f32.mrf.mxu0  ;;  %v448_v56 = vpop.f32.mrf.mxu1 }
 0x125   :  { %v522_v51 = vmul.f32 -1.442695, %v454_v48  ;;  %v461_v57 = vadd.f32 %v409_v50, %v169_v55 }
 0x126   :  { %v411_v52 = vpop.f32.mrf.mxu0  ;;  %v559_v58 = vpop.f32.mrf.mxu1 }
 0x127   :  { %608 = vpow2.f32 %v522_v51  ;;  %v523_v60 = vmul.f32 -1.442695, %v461_v57 }
 0x128   :  { %v412_v54 = vpop.f32.mrf.mxu0  ;;  %v451_v59 = vpop.f32.mrf.mxu1 }
 0x129   :  { %610 = vpow2.f32 %v523_v60 }
 0x12a   :  { %v560_v61 = vpop.f32.mrf.mxu1 }
 0x134   :  { %v609_v62 = vpop.eup %608 }
 0x135   :  { %v458_v63 = vadd.f32 1.0, %v609_v62 }
 0x136   :  { %v611_v2 = vpop.eup %610 }
 0x137   :  { %612 = vrcp.f32 %v458_v63  ;;  %v465_v6 = vadd.f32 1.0, %v611_v2 }
 0x144   :  { %v613_v3 = vpop.eup %612 }
 0x145   :  { %v468_v5 = vmul.f32 %v613_v3, %v448_v56 }
 0x147   :  { %v469_v7 = vadd.f32 %v468_v5, %v208_v4 }
 0x149   :  { %614 = vtanh.f32 %v469_v7 }
 0x14a   :  { %616 = vrcp.f32 %v465_v6 }
 0x156   :  { %v615_v9 = vpop.eup %614 }
 0x157   :  { %v472_v10 = vsub.f32 %v471_v8, %v615_v9  ;;  %v617_v11 = vpop.eup %616 }
 0x159   :  { %v473_v12 = vmul.f32 %v617_v11, %v472_v10 }
 0x15b   :  { %v474_v13 = vadd.f32 %v615_v9, %v473_v12 }
 0x15d   :  { %475 = vst [vmem:[#allocation11] sm:$0xff] %v474_v13 }
 0x15e   :  { %729 = shalt.err (!%p726_p1)
}
 0x15f   :  { %485 = dma.vmem_to_hbm [thread:$0]  %s483_s21, 128, %s840_s6, [#allocation4]  }
 0x160   :  { %744 = dma.done.wait [#allocation4], 128  }
 0x161   :  { %745 = vsyncadd [#allocation4], 4294967168 }
 0x162   :  { %489 = vsyncpa [#allocation3], 1 }
 0x163   :  { %490 = vsyncpa [#allocation6], 1 }
 0x164   :  { %491 = vsyncpa [#allocation9], 1 }
 0x165   :  { %492 = vsyncpa [#allocation4], 1 }

</bundles_post_ra>
